<compile_context>
chip_gen: v6e
topology: v6e:2x2x1
jax: 0.10.0
libtpu: 0.0.40
codegen_flags: <defaults>
</compile_context>

<pallas_src>
import functools
import math

import jax
import jax.numpy as jnp
from jax.experimental import pallas as pl
from jax.experimental.pallas import tpu as pltpu


def _nle_kernel(x_ref, w_ref, b_ref, out_ref, *, F, dim, pack):
    """One row-tile of the NLEmbedding forward.

    x_ref  : (tile, pack*F)       f32  -- `pack` logical rows per physical row
    w_ref  : (F, dim)             f32  -- resident across the whole grid
    b_ref  : (1, dim)             f32
    out_ref: (tile, pack*2*dim)   f32  -- [sin | cos] per packed logical row
    """
    x = x_ref[...]
    w = w_ref[...]
    b = b_ref[...]
    for p in range(pack):
        # Degenerate contraction (F == 2): two VPU broadcast-multiply-adds
        # instead of a >98%-idle MXU matmul.
        y = b
        for k in range(F):
            col = x[:, p * F + k:p * F + k + 1]        # (tile, 1)
            y = y + col * w[k:k + 1, :]                # (tile, dim)
        base = p * 2 * dim
        out_ref[:, base:base + dim] = jnp.sin(y)       # direct slice-stores,
        out_ref[:, base + dim:base + 2 * dim] = jnp.cos(y)  # no concatenate


def nl_embedding(x, weight, bias, dim, *, max_tile_rows=2048):
    """Pallas-backed NLEmbedding forward.

    x      : (..., F) with F == 2 (required for the final view to be legal)
    weight : (F, dim)
    bias   : (dim,)
    returns: (*x.shape, dim) float32
    """
    shape = x.shape
    F = shape[-1]
    # The PyTorch `pos_emb.view(*shape, dim)` is only shape-consistent when the
    # trailing input dim is 2 (prod(shape)*dim == prod(shape[:-1])*2*dim).
    assert F == 2, f"NLEmbedding requires input.shape[-1] == 2, got {F}"
    assert weight.shape == (F, dim), weight.shape
    assert bias.shape == (dim,), bias.shape

    f32 = jnp.float32
    x2d = x.reshape(-1, F)
    if x2d.dtype != f32:
        x2d = x2d.astype(f32)
    w = weight if weight.dtype == f32 else weight.astype(f32)
    b2d = bias.reshape(1, dim)
    if b2d.dtype != f32:
        b2d = b2d.astype(f32)

    B = x2d.shape[0]              # logical rows = prod(shape[:-1])
    lanes = 2 * dim

    # Pack logical rows per physical row so the output last dim reaches 128
    # lanes (unmasked vst + full writeback-DMA efficiency).
    pack = max(1, 128 // lanes)
    if pack > 1 and B % pack != 0:
        pack = 1                  # fall back; semantics unchanged
    rows = B // pack
    x_packed = x2d.reshape(rows, pack * F)

    tile = rows if rows <= max_tile_rows else max_tile_rows  # multiple of 8 or full
    grid = (pl.cdiv(rows, tile),)

    kernel = functools.partial(_nle_kernel, F=F, dim=dim, pack=pack)

    cost = pl.CostEstimate(
        flops=2 * B * F * dim,
        transcendentals=2 * B * dim,
        bytes_accessed=4 * (B * F + F * dim + dim + B * 2 * dim),
    )

    out_packed = pl.pallas_call(
        kernel,
        out_shape=jax.ShapeDtypeStruct((rows, pack * 2 * dim), f32),
        grid=grid,
        in_specs=[
            pl.BlockSpec((tile, pack * F), lambda i: (i, 0)),   # streamed rows
            pl.BlockSpec((F, dim), lambda i: (0, 0)),           # weight resident
            pl.BlockSpec((1, dim), lambda i: (0, 0)),           # bias resident
        ],
        out_specs=pl.BlockSpec((tile, pack * 2 * dim), lambda i: (i, 0)),
        compiler_params=pltpu.CompilerParams(
            dimension_semantics=("parallel",)),
        cost_estimate=cost,
    )(x_packed, w, b2d)

    out2d = out_packed.reshape(B, 2 * dim)   # un-pack rows (layout plumbing)
    return out2d.reshape(*shape, dim)        # matches torch's view(*shape, dim)


def _reference(x, weight, bias, dim):
    y = x.reshape(-1, x.shape[-1]).astype(jnp.float32) @ weight + bias
    pos = jnp.concatenate([jnp.sin(y), jnp.cos(y)], axis=-1)
    return pos.reshape(*x.shape, dim)


if __name__ == "__main__":
    key = jax.random.PRNGKey(0)
    k_x, k_w, k_b, k_x2 = jax.random.split(key, 4)

    batch = 8
    in_features = 2   # trailing dim of the noise-level input (makes the view legal)
    dim = 32

    # nn.Linear default init: U(-1/sqrt(fan_in), +1/sqrt(fan_in)); kept in f32
    # once at init so the wrapper never re-casts params per call.
    bound = 1.0 / math.sqrt(in_features)
    weight = jax.random.uniform(k_w, (in_features, dim), jnp.float32, -bound, bound)
    bias = jax.random.uniform(k_b, (dim,), jnp.float32, -bound, bound)

    x = jax.random.uniform(k_x, (batch, in_features), jnp.float32)

    out = nl_embedding(x, weight, bias, dim)
    out = jax.block_until_ready(out)

    ref = _reference(x, weight, bias, dim)
    assert out.shape == (batch, in_features, dim), out.shape
    assert jnp.allclose(out, ref, atol=1e-5, rtol=1e-5), float(jnp.max(jnp.abs(out - ref)))

    # Second check: exercise the multi-block grid path (masked last block) at a
    # still-small size by forcing a tiny row tile.
    x_big = jax.random.uniform(k_x2, (40, in_features), jnp.float32)
    out_big = jax.block_until_ready(
        nl_embedding(x_big, weight, bias, dim, max_tile_rows=8))
    ref_big = _reference(x_big, weight, bias, dim)
    assert out_big.shape == (40, in_features, dim), out_big.shape
    assert jnp.allclose(out_big, ref_big, atol=1e-5, rtol=1e-5), float(
        jnp.max(jnp.abs(out_big - ref_big)))

    print("KERNEL_OK")
</pallas_src>

<mosaic_0001>
module attributes {stable_mosaic.version = 11 : i64} {
  func.func @_nle_kernel(%arg0: i32, %arg1: memref<4x4xf32, #tpu.memory_space<vmem>>, %arg2: memref<2x32xf32, #tpu.memory_space<vmem>>, %arg3: memref<1x32xf32, #tpu.memory_space<vmem>>, %arg4: memref<4x128xf32, #tpu.memory_space<vmem>>) attributes {dimension_semantics = [#tpu.dimension_semantics<parallel>], iteration_bounds = array<i64: 1>, scalar_prefetch = 0 : i64, scratch_operands = 0 : i64, tpu.core_type = #tpu.core_type<tc>, window_params = [{transform_indices = @transform_0, window_bounds = array<i64: 4, 4>}, {pipeline_mode = #tpu.pipeline_mode<synchronous>, transform_indices = @transform_1, window_bounds = array<i64: 2, 32>}, {pipeline_mode = #tpu.pipeline_mode<synchronous>, transform_indices = @transform_2, window_bounds = array<i64: 1, 32>}, {transform_indices = @transform_3, window_bounds = array<i64: 4, 128>}]} {
    %c0 = arith.constant 0 : index
    %c0_0 = arith.constant 0 : index
    %0 = vector.load %arg1[%c0, %c0_0] : memref<4x4xf32, #tpu.memory_space<vmem>>, vector<4x4xf32>
    %c0_1 = arith.constant 0 : index
    %c0_2 = arith.constant 0 : index
    %1 = vector.load %arg2[%c0_1, %c0_2] : memref<2x32xf32, #tpu.memory_space<vmem>>, vector<2x32xf32>
    %c0_3 = arith.constant 0 : index
    %c0_4 = arith.constant 0 : index
    %2 = vector.load %arg3[%c0_3, %c0_4] : memref<1x32xf32, #tpu.memory_space<vmem>>, vector<1x32xf32>
    %3 = vector.extract_strided_slice %0 {offsets = [0, 0], sizes = [4, 1], strides = [1, 1]} : vector<4x4xf32> to vector<4x1xf32>
    %4 = vector.extract_strided_slice %1 {offsets = [0, 0], sizes = [1, 32], strides = [1, 1]} : vector<2x32xf32> to vector<1x32xf32>
    %5 = vector.broadcast %3 : vector<4x1xf32> to vector<4x32xf32>
    %6 = vector.broadcast %4 : vector<1x32xf32> to vector<4x32xf32>
    %7 = arith.mulf %5, %6 : vector<4x32xf32>
    %8 = vector.broadcast %2 : vector<1x32xf32> to vector<4x32xf32>
    %9 = arith.addf %8, %7 : vector<4x32xf32>
    %10 = vector.extract_strided_slice %0 {offsets = [0, 1], sizes = [4, 1], strides = [1, 1]} : vector<4x4xf32> to vector<4x1xf32>
    %11 = vector.extract_strided_slice %1 {offsets = [1, 0], sizes = [1, 32], strides = [1, 1]} : vector<2x32xf32> to vector<1x32xf32>
    %12 = vector.broadcast %10 : vector<4x1xf32> to vector<4x32xf32>
    %13 = vector.broadcast %11 : vector<1x32xf32> to vector<4x32xf32>
    %14 = arith.mulf %12, %13 : vector<4x32xf32>
    %15 = arith.addf %9, %14 : vector<4x32xf32>
    %16 = math.sin %15 : vector<4x32xf32>
    %c0_5 = arith.constant 0 : index
    %c0_6 = arith.constant 0 : index
    %17 = vector.load %arg4[%c0_5, %c0_6] : memref<4x128xf32, #tpu.memory_space<vmem>>, vector<4x32xf32>
    tpu.vector_store %arg4[%c0_5, %c0_6], %16 {strides = array<i32>} : memref<4x128xf32, #tpu.memory_space<vmem>>, vector<4x32xf32>,
    %18 = math.cos %15 : vector<4x32xf32>
    %c0_7 = arith.constant 0 : index
    %c32 = arith.constant 32 : index
    %19 = vector.load %arg4[%c0_7, %c32] : memref<4x128xf32, #tpu.memory_space<vmem>>, vector<4x32xf32>
    tpu.vector_store %arg4[%c0_7, %c32], %18 {strides = array<i32>} : memref<4x128xf32, #tpu.memory_space<vmem>>, vector<4x32xf32>,
    %20 = vector.extract_strided_slice %0 {offsets = [0, 2], sizes = [4, 1], strides = [1, 1]} : vector<4x4xf32> to vector<4x1xf32>
    %21 = vector.extract_strided_slice %1 {offsets = [0, 0], sizes = [1, 32], strides = [1, 1]} : vector<2x32xf32> to vector<1x32xf32>
    %22 = vector.broadcast %20 : vector<4x1xf32> to vector<4x32xf32>
    %23 = vector.broadcast %21 : vector<1x32xf32> to vector<4x32xf32>
    %24 = arith.mulf %22, %23 : vector<4x32xf32>
    %25 = vector.broadcast %2 : vector<1x32xf32> to vector<4x32xf32>
    %26 = arith.addf %25, %24 : vector<4x32xf32>
    %27 = vector.extract_strided_slice %0 {offsets = [0, 3], sizes = [4, 1], strides = [1, 1]} : vector<4x4xf32> to vector<4x1xf32>
    %28 = vector.extract_strided_slice %1 {offsets = [1, 0], sizes = [1, 32], strides = [1, 1]} : vector<2x32xf32> to vector<1x32xf32>
    %29 = vector.broadcast %27 : vector<4x1xf32> to vector<4x32xf32>
    %30 = vector.broadcast %28 : vector<1x32xf32> to vector<4x32xf32>
    %31 = arith.mulf %29, %30 : vector<4x32xf32>
    %32 = arith.addf %26, %31 : vector<4x32xf32>
    %33 = math.sin %32 : vector<4x32xf32>
    %c0_8 = arith.constant 0 : index
    %c64 = arith.constant 64 : index
    %34 = vector.load %arg4[%c0_8, %c64] : memref<4x128xf32, #tpu.memory_space<vmem>>, vector<4x32xf32>
    tpu.vector_store %arg4[%c0_8, %c64], %33 {strides = array<i32>} : memref<4x128xf32, #tpu.memory_space<vmem>>, vector<4x32xf32>,
    %35 = math.cos %32 : vector<4x32xf32>
    %c0_9 = arith.constant 0 : index
    %c96 = arith.constant 96 : index
    %36 = vector.load %arg4[%c0_9, %c96] : memref<4x128xf32, #tpu.memory_space<vmem>>, vector<4x32xf32>
    tpu.vector_store %arg4[%c0_9, %c96], %35 {strides = array<i32>} : memref<4x128xf32, #tpu.memory_space<vmem>>, vector<4x32xf32>,
    return
  }
  func.func @transform_0(%arg0: i32) -> (i32, i32) {
    %c0_i32 = arith.constant 0 : i32
    %c0_i32_0 = arith.constant 0 : i32
    return %arg0, %c0_i32 : i32, i32
  }
  func.func @transform_1(%arg0: i32) -> (i32, i32) {
    %c0_i32 = arith.constant 0 : i32
    %c0_i32_0 = arith.constant 0 : i32
    %c0_i32_1 = arith.constant 0 : i32
    return %c0_i32, %c0_i32_0 : i32, i32
  }
  func.func @transform_2(%arg0: i32) -> (i32, i32) {
    %c0_i32 = arith.constant 0 : i32
    %c0_i32_0 = arith.constant 0 : i32
    %c0_i32_1 = arith.constant 0 : i32
    return %c0_i32, %c0_i32_0 : i32, i32
  }
  func.func @transform_3(%arg0: i32) -> (i32, i32) {
    %c0_i32 = arith.constant 0 : i32
    %c0_i32_0 = arith.constant 0 : i32
    return %arg0, %c0_i32 : i32, i32
  }
}

</mosaic_0001>

<bundles_post_ra>
// kernel: tpu_custom_call.1
= control target key start
LH: loop header
LB: loop body
LE: loop exit
PB: predicated region body
PF: predicated region fallthrough
CT: control target
= control target key end

     0   :  { %8 = vsyncpa [#allocation3], 0  ;;  %s781_s0 = inlined_call_operand.hbm [shape: f32[4,4], index: 0, kind: input, shape index: {}]   ;;  %s782_s1 = inlined_call_operand.hbm [shape: f32[2,32], index: 1, kind: input, shape index: {}]   ;;  %s783_s2 = inlined_call_operand.vmem [shape: f32[1,32], index: 2, kind: input, shape index: {}]   ;;  %s784_s3 = inlined_call_operand.hbm [shape: f32[4,128], index: 3, kind: output, shape index: {}]  }
   0x1   :  { %9 = vsyncpa [#allocation6], 0 }
   0x2   :  { %10 = vsyncpa [#allocation4], 0  ;;  %s651_s12 = smov [#allocation2]   ;;  %s652_s14 = smov [#allocation5]  }
   0x3   :  { %s17_s13 = sshll.u32 %s651_s12, 4  ;;  %s27_s15 = sshll.u32 %s652_s14, 4  ;;  %s18_s13 = int_to_ptr.vmem [resolvable:$true] %s17_s13  ;;  %s28_s15 = int_to_ptr.vmem [resolvable:$true] %s27_s15 }
   0x4   :  { %s593_s16 = scalar_lea.vmem %s18_s13, 64  ;;  %p598_p1 = scmp.lt.s32.totalorder %s18_s13, %s18_s13 }
   0x5   :  { %p594_p0 = scmp.ne.s32.totalorder %s18_s13, %s593_s16  ;;  %p599_p2 = scmp.lt.s32.totalorder %s593_s16, %s593_s16 }
   0x7   :  { %p600_p3 = por %p599_p2, %p598_p1 }
   0x9   :  { %p601_p4 = pnand %p600_p3, %p594_p0 }
   0xb   :  { %604 = shalt.err (!%p601_p4)
}
   0xc   :  { %20 = dma.hbm_to_vmem [thread:$0]  %s781_s0, 64, %s18_s13, [#allocation3]  }
   0xd   :  { %s613_s19 = scalar_lea.vmem %s28_s15, 32  ;;  %p618_p6 = scmp.lt.s32.totalorder %s28_s15, %s28_s15 }
   0xe   :  { %p614_p5 = scmp.ne.s32.totalorder %s28_s15, %s613_s19  ;;  %p619_p7 = scmp.lt.s32.totalorder %s613_s19, %s613_s19 }
  0x10   :  { %p620_p8 = por %p619_p7, %p618_p6 }
  0x12   :  { %p621_p9 = pnand %p620_p8, %p614_p5 }
  0x14   :  { %624 = shalt.err (!%p621_p9)
}
  0x15   :  { %30 = dma.hbm_to_vmem [thread:$0]  %s782_s1, 32, %s28_s15, [#allocation6]  }
  0x16   :  { %645 = dma.done.wait [#allocation3], 64  }
  0x17   :  { %646 = vsyncadd [#allocation3], 4294967232 }
  0x18   :  { %647 = dma.done.wait [#allocation6], 32  }
  0x19   :  { %648 = vsyncadd [#allocation6], 4294967264  ;;  %v653_v0 = vmov 0   ;;  %v654_v1 = vmov 1   ;;  %v39_v2 = vld [vmem:[#allocation2] sm:$0xf]  ;;  %v47_v5 = vlaneseq }
  0x1a   :  { %572 = vset.pattern.permute.xlu0 %v653_v0  ;;  %574 = vset.pattern.permute.xlu1 %v654_v1  ;;  %v655_v3 = vmov 2   ;;  %v656_v4 = vmov 3   ;;  %v40_v9 = vld [vmem:[#allocation5] sm:$0x3]  ;;  %v531_v12 = vld [vmem:[%s783_s2] ss:$0 sm:$0xff] }
  0x1b   :  { %44 = vperm.xlu0 %572, %v39_v2   ;;  %60 = vperm.xlu1 %574, %v39_v2   ;;  %v48_v6 = vshrl.u32 %v47_v5, 7  ;;  %v657_v43 = vmov 2102212464   ;;  %v658_v45 = vmov 920167782   ;;  %s663_s2 = smov 32  }
  0x1c   :  { %v659_v49 = vmov 1326507024   ;;  %v660_v53 = vmov 683565275   ;;  %v661_v55 = vmov 2475754826  }
  0x1d   :  { %v49_v7 = vsub.s32 0, %v48_v6  ;;  %v65_v8 = vsub.s32 1, %v48_v6  ;;  %v662_v57 = vmov 2131351028   ;;  %s664_s22 = smov 96   ;;  %s665_s23 = smov 64  }
  0x1e   :  { %s666_s24 = smov [#allocation7]  }
  0x1f   :  { %573 = vset.pattern.permute.xlu0 %v655_v3  ;;  %575 = vset.pattern.permute.xlu1 %v656_v4  ;;  %v50_v10 = vrot.slane %v40_v9, %v49_v7  ;;  %v66_v11 = vrot.slane %v40_v9, %v65_v8  ;;  %s521_s25 = sshll.u32 %s666_s24, 4  ;;  %s522_s25 = int_to_ptr.vmem [resolvable:$true] %s521_s25 }
  0x20   :  { %285 = vperm.xlu0 %573, %v39_v2   ;;  %291 = vperm.xlu1 %575, %v39_v2   ;;  %s625_s26 = scalar_lea.vmem %s522_s25, 64  ;;  %p630_p11 = scmp.lt.s32.totalorder %s522_s25, %s522_s25 }
  0x21   :  { %p626_p10 = scmp.ne.s32.totalorder %s522_s25, %s625_s26  ;;  %p631_p12 = scmp.lt.s32.totalorder %s625_s26, %s625_s26 }
  0x23   :  { %p632_p13 = por %p631_p12, %p630_p11 }
  0x24   :  { %576 = vset.pattern.permute.xlu0 %v656_v4 }
  0x25   :  { %p633_p0 = pnand %p632_p13, %p626_p10 }
  0x96   :  { %v45_v13 = vpop.permute.xlu0 %44  ;;  %v61_v14 = vpop.permute.xlu1 %60 }
  0x97   :  { %v51_v15 = vmul.f32 %v50_v10, %v45_v13  ;;  %v67_v16 = vmul.f32 %v66_v11, %v61_v14 }
  0x99   :  { %v58_v17 = vadd.f32 %v531_v12, %v51_v15 }
  0x9b   :  { %v696_v18 = vadd.f32 %v67_v16, %v58_v17  ;;  %v286_v19 = vpop.permute.xlu0 %285  ;;  %v292_v20 = vpop.permute.xlu1 %291 }
  0x9c   :  { %v288_v21 = vmul.f32 %v286_v19, %v50_v10  ;;  %v294_v22 = vmul.f32 %v292_v20, %v66_v11 }
  0x9d   :  { %v72_v23 = vand.u32 2139095040, %v696_v18  ;;  %v69_v24 = vand.u32 2147483647, %v696_v18  ;;  %vm71_vm14 = vcmp.lt.s32.totalorder %v696_v18, 0 }
  0x9e   :  { %v289_v25 = vadd.f32 %v531_v12, %v288_v21 }
  0x9f   :  { %v73_v26 = vshrl.u32 %v72_v23, 23  ;;  %v76_v29 = vand.u32 8388607, %v69_v24  ;;  %vm70_vm15 = vcmp.le.f32.partialorder %v69_v24, 0.7853982 }
  0xa0   :  { %v700_v27 = vadd.f32 %v294_v22, %v289_v25 }
  0xa1   :  { %v532_v28 = vadd.s32 4294967169, %v73_v26  ;;  %v77_v34 = vor.u32 8388608, %v76_v29 }
  0xa2   :  { %v299_v30 = vand.u32 2139095040, %v700_v27  ;;  %v296_v31 = vand.u32 2147483647, %v700_v27 }
  0xa3   :  { %v79_v32 = vadd.s32 1, %v532_v28  ;;  %v710_v42 = vshll.u32 %v77_v34, 8 }
  0xa4   :  { %v300_v33 = vshrl.u32 %v299_v30, 23  ;;  %v708_v37 = vand.u32 8388607, %v296_v31 }
  0xa5   :  { %vm80_vm0 = vcmp.gt.s32.totalorder %v79_v32, 0 }
  0xa6   :  { %v81_v35 = vsel %vm80_vm0, %v79_v32, 0  ;;  %v540_v36 = vadd.s32 4294967169, %v300_v33  ;;  %v304_v47 = vor.u32 8388608, %v708_v37  ;;  %vm298_vm0 = vcmp.lt.s32.totalorder %v700_v27, 0 }
  0xa7   :  { %v82_v38 = vshrl.u32 %v81_v35, 5  ;;  %v83_v39 = vand.u32 31, %v81_v35 }
  0xa8   :  { %v306_v40 = vadd.s32 1, %v540_v36 }
  0xa9   :  { %v84_v41 = vsub.s32 32, %v83_v39  ;;  %v95_v44 = vshll.u32 %v657_v43, %v83_v39  ;;  %v98_v46 = vshll.u32 %v658_v45, %v83_v39  ;;  %vm104_vm2 = vcmp.lt.s32.totalorder %v82_v38, 4 }
  0xaa   :  { %vm307_vm1 = vcmp.gt.s32.totalorder %v306_v40, 0  ;;  %v86_v54 = vshll.u32 %v660_v53, %v83_v39  ;;  %v89_v61 = vshll.u32 %v661_v55, %v83_v39  ;;  %v92_v1 = vshll.u32 %v662_v57, %v83_v39 }
  0xab   :  { %v96_v48 = vshrl.u32 %v658_v45, %v84_v41  ;;  %v99_v50 = vshrl.u32 %v659_v49, %v84_v41  ;;  %v308_v51 = vsel %vm307_vm1, %v306_v40, 0  ;;  %v87_v56 = vshrl.u32 %v661_v55, %v84_v41 }
  0xac   :  { %v310_v52 = vand.u32 31, %v308_v51  ;;  %v90_v58 = vshrl.u32 %v662_v57, %v84_v41  ;;  %v93_v62 = vshrl.u32 %v657_v43, %v84_v41  ;;  %v714_v63 = vshrl.u32 %v308_v51, 5 }
  0xad   :  { %v97_v59 = vor.u32 %v96_v48, %v95_v44  ;;  %v100_v60 = vor.u32 %v99_v50, %v98_v46  ;;  %vm101_vm3 = vcmp.lt.s32.totalorder %v82_v38, 1  ;;  %v88_v4 = vor.u32 %v87_v56, %v86_v54 }
  0xae   :  { %v311_v0 = vsub.s32 32, %v310_v52  ;;  %v325_v3 = vshll.u32 %v658_v45, %v310_v52  ;;  %v91_v5 = vor.u32 %v90_v58, %v89_v61  ;;  %v94_v9 = vor.u32 %v93_v62, %v92_v1 }
  0xaf   :  { %v110_v2 = vsel %vm104_vm2, %v97_v59, 920167782  ;;  %v114_v6 = vsel %vm104_vm2, %v100_v60, 1326507024  ;;  %v322_v10 = vshll.u32 %v657_v43, %v310_v52  ;;  %v85_v11 = vshrl.u32 %v660_v53, %v84_v41 }
  0xb0   :  { %v323_v7 = vshrl.u32 %v658_v45, %v311_v0  ;;  %v326_v8 = vshrl.u32 %v659_v49, %v311_v0  ;;  %vm103_vm4 = vcmp.lt.s32.totalorder %v82_v38, 3  ;;  %v109_v12 = vsel %vm101_vm3, %v88_v4, %v91_v5 }
  0xb1   :  { %vm102_vm5 = vcmp.lt.s32.totalorder %v82_v38, 2  ;;  %v106_v14 = vsel %vm104_vm2, %v94_v9, 2102212464  ;;  %v111_v15 = vsel %vm103_vm4, %v94_v9, %v110_v2  ;;  %vm331_vm6 = vcmp.lt.s32.totalorder %v714_v63, 4 }
  0xb2   :  { %v327_v13 = vor.u32 %v326_v8, %v325_v3  ;;  %v112_v16 = vsel %vm102_vm5, %v109_v12, %v111_v15  ;;  %v113_v17 = vsel %vm101_vm3, %v91_v5, %v94_v9  ;;  %v115_v19 = vsel %vm103_vm4, %v97_v59, %v114_v6 }
  0xb3   :  { %v324_v20 = vor.u32 %v323_v7, %v322_v10  ;;  %v105_v21 = vsel %vm101_vm3, %v85_v11, %v88_v4  ;;  %v107_v22 = vsel %vm103_vm4, %v91_v5, %v106_v14  ;;  %v116_v23 = vsel %vm102_vm5, %v113_v17, %v115_v19 }
  0xb4   :  { %v727_v25 = vmul.u32.u64.low %v710_v42, %v116_v23  ;;  %v728_v26 = vmul.u32.u64.high %v710_v42, %v116_v23, %v727_v25  ;;  %v731_v28 = vmul.u32.u64.low %v710_v42, %v112_v16  ;;  %v732_v29 = vmul.u32.u64.high %v710_v42, %v112_v16, %v731_v28 }
  0xb5   :  { %v341_v30 = vsel %vm331_vm6, %v327_v13, 1326507024  ;;  %v313_v32 = vshll.u32 %v660_v53, %v310_v52  ;;  %v314_v33 = vshrl.u32 %v661_v55, %v311_v0  ;;  %v108_v34 = vsel %vm102_vm5, %v105_v21, %v107_v22 }
  0xb6   :  { %v316_v35 = vshll.u32 %v661_v55, %v310_v52  ;;  %v317_v36 = vshrl.u32 %v662_v57, %v311_v0  ;;  %v320_v37 = vshrl.u32 %v657_v43, %v311_v0  ;;  %v337_v39 = vsel %vm331_vm6, %v324_v20, 920167782 }
  0xb7   :  { %v315_v40 = vor.u32 %v314_v33, %v313_v32  ;;  %v319_v41 = vshll.u32 %v662_v57, %v310_v52  ;;  %v344_v44 = vshll.u32 %v304_v47, 8  ;;  %vm126_vm7 = vc.u32 %v728_v26, %v731_v28 }
  0xb8   :  { %v127_v45 = vadd.s32 1, %v732_v29  ;;  %v318_v46 = vor.u32 %v317_v36, %v316_v35  ;;  %vm330_vm8 = vcmp.lt.s32.totalorder %v714_v63, 3  ;;  %v124_v48 = vmul.u32 %v710_v42, %v108_v34 }
  0xb9   :  { %v321_v38 = vor.u32 %v320_v37, %v319_v41  ;;  %vm328_vm9 = vcmp.lt.s32.totalorder %v714_v63, 1  ;;  %v342_v43 = vsel %vm330_vm8, %v324_v20, %v341_v30  ;;  %v312_v50 = vshrl.u32 %v660_v53, %v311_v0 }
  0xba   :  { %v128_v49 = vsel %vm126_vm7, %v127_v45, %v732_v29  ;;  %vm329_vm10 = vcmp.lt.s32.totalorder %v714_v63, 2  ;;  %v336_v47 = vsel %vm328_vm9, %v315_v40, %v318_v46  ;;  %v125_v16 = vadd.s32 %v731_v28, %v728_v26 }
  0xbb   :  { %v129_v51 = vadd.s32 %v128_v49, %v124_v48  ;;  %v333_v52 = vsel %vm331_vm6, %v321_v38, 2102212464  ;;  %v338_v42 = vsel %vm330_vm8, %v321_v38, %v337_v39  ;;  %v340_v54 = vsel %vm328_vm9, %v318_v46, %v321_v38 }
  0xbc   :  { %v332_v55 = vsel %vm328_vm9, %v312_v50, %v315_v40  ;;  %v339_v56 = vsel %vm329_vm10, %v336_v47, %v338_v42  ;;  %v343_v57 = vsel %vm329_vm10, %v340_v54, %v342_v43  ;;  %v334_v59 = vsel %vm330_vm8, %v318_v46, %v333_v52 }
  0xbd   :  { %v130_v58 = vadd.s32 536870912, %v129_v51  ;;  %v756_v60 = vmul.u32.u64.low %v344_v44, %v343_v57  ;;  %v757_v53 = vmul.u32.u64.high %v344_v44, %v343_v57, %v756_v60  ;;  %v335_v1 = vsel %vm329_vm10, %v332_v55, %v334_v59 }
  0xbe   :  { %v759_v61 = vmul.u32.u64.low %v344_v44, %v339_v56  ;;  %v760_v62 = vmul.u32.u64.high %v344_v44, %v339_v56, %v759_v61  ;;  %v351_v5 = vmul.u32 %v344_v44, %v335_v1  ;;  %vm297_vm1 = vcmp.le.f32.partialorder %v296_v31, 0.7853982 }
  0xbf   :  { %v131_v0 = vshrl.u32 %v130_v58, 30  ;;  %vm173_vm2 = vcmask 257024   ;;  %vm161_vm9 = vweird.f32 %v696_v18 }
  0xc0   :  { %vm353_vm11 = vc.u32 %v757_v53, %v759_v61  ;;  %v354_v3 = vadd.s32 1, %v760_v62  ;;  %v352_v40 = vadd.s32 %v759_v61, %v757_v53 }
  0xc1   :  { %v132_v2 = vshll.u32 %v131_v0, 30  ;;  %v155_v44 = vsub.s32 4, %v131_v0 }
  0xc2   :  { %v355_v6 = vsel %vm353_vm11, %v354_v3, %v760_v62 }
  0xc3   :  { %v133_v4 = vsub.s32 %v129_v51, %v132_v2  ;;  %v356_v63 = vadd.s32 %v355_v6, %v351_v5  ;;  %v156_v47 = vsel %vm71_vm14, %v155_v44, %v131_v0 }
  0xc4   :  { %v158_v54 = vsel %vm70_vm15, 0, %v156_v47 }
  0xc5   :  { %v135_v7 = vsub.s32 0, %v133_v4  ;;  %v357_v9 = vadd.s32 536870912, %v356_v63  ;;  %v162_v56 = vadd.s32 3, %v158_v54  ;;  %v268_v53 = vand.u32 3, %v158_v54 }
  0xc7   :  { %v533_v8 = vmin.u32 %v135_v7, %v133_v4  ;;  %v358_v11 = vshrl.u32 %v357_v9, 30  ;;  %v163_v60 = vand.u32 3, %v162_v56  ;;  %vm273_vm4 = vcmp.eq.s32.totalorder %v268_v53, 2 }
  0xc8   :  { %vm270_vm6 = vcmp.eq.s32.totalorder %v268_v53, 0  ;;  %vm269_vm8 = vcmp.lt.s32.totalorder %v268_v53, 2 }
  0xc9   :  { %v137_v10 = vclz %v533_v8  ;;  %v359_v13 = vshll.u32 %v358_v11, 30  ;;  %v382_v58 = vsub.s32 4, %v358_v11  ;;  %vm168_vm3 = vcmp.eq.s32.totalorder %v163_v60, 2 }
  0xca   :  { %vm165_vm5 = vcmp.eq.s32.totalorder %v163_v60, 0  ;;  %vm164_vm7 = vcmp.lt.s32.totalorder %v163_v60, 2 }
  0xcb   :  { %v534_v12 = vadd.s32 4294967294, %v137_v10  ;;  %v360_v15 = vsub.s32 %v356_v63, %v359_v13  ;;  %v383_v61 = vsel %vm298_vm0, %v382_v58, %v358_v11 }
  0xcc   :  { %v385_v3 = vsel %vm297_vm1, 0, %v383_v61 }
  0xcd   :  { %vm535_vm12 = vcmp.lt.s32.totalorder %v534_v12, 0  ;;  %v362_v20 = vsub.s32 0, %v360_v15  ;;  %v389_v8 = vadd.s32 3, %v385_v3  ;;  %v499_v11 = vand.u32 3, %v385_v3 }
  0xce   :  { %v140_v14 = vsel %vm535_vm12, 0, %v534_v12 }
  0xcf   :  { %v141_v17 = vsub.s32 32, %v140_v14  ;;  %v145_v19 = vsub.s32 4294967266, %v140_v14  ;;  %v142_v21 = vshll.u32 %v133_v4, %v140_v14  ;;  %v541_v25 = vmin.u32 %v362_v20, %v360_v15 }
  0xd0   :  { %v390_v12 = vand.u32 3, %v389_v8  ;;  %vm504_vm10 = vcmp.eq.s32.totalorder %v499_v11, 2  ;;  %vm501_vm12 = vcmp.eq.s32.totalorder %v499_v11, 0 }
  0xd1   :  { %v143_v22 = vshrl.u32 %v125_v16, %v141_v17  ;;  %v146_v23 = vadd.s32 127, %v145_v19  ;;  %v364_v32 = vclz %v541_v25 }
  0xd2   :  { %vm395_vm11 = vcmp.eq.s32.totalorder %v390_v12, 2 }
  0xd3   :  { %v144_v29 = vor.u32 %v143_v22, %v142_v21  ;;  %v147_v30 = vshll.u32 %v146_v23, 23  ;;  %v542_v34 = vadd.s32 4294967294, %v364_v32 }
  0xd5   :  { %v148_v33 = vor.u32 4788187, %v147_v30  ;;  %v151_v36 = vcvt.s32.f32 %v144_v29  ;;  %vm543_vm13 = vcmp.lt.s32.totalorder %v542_v34, 0 }
  0xd6   :  { %v367_v39 = vsel %vm543_vm13, 0, %v542_v34  ;;  %vm392_vm13 = vcmp.eq.s32.totalorder %v390_v12, 0 }
  0xd7   :  { %v149_v35 = vand.u32 2147483647, %v148_v33  ;;  %v368_v26 = vsub.s32 32, %v367_v39  ;;  %v372_v28 = vsub.s32 4294967266, %v367_v39  ;;  %v369_v45 = vshll.u32 %v360_v15, %v367_v39 }
  0xd9   :  { %v152_v37 = vmul.f32 %v151_v36, %v149_v35  ;;  %v370_v46 = vshrl.u32 %v352_v40, %v368_v26  ;;  %v373_v48 = vadd.s32 127, %v372_v28 }
  0xdb   :  { %v153_v41 = vxor.u32 2147483648, %v152_v37  ;;  %v371_v49 = vor.u32 %v370_v46, %v369_v45  ;;  %v374_v50 = vshll.u32 %v373_v48, 23 }
  0xdd   :  { %v154_v38 = vsel %vm71_vm14, %v153_v41, %v152_v37  ;;  %v375_v51 = vor.u32 4788187, %v374_v50  ;;  %v378_v42 = vcvt.s32.f32 %v371_v49  ;;  %vm500_vm14 = vcmp.lt.s32.totalorder %v499_v11, 2 }
  0xde   :  { %v157_v43 = vsel %vm70_vm15, %v696_v18, %v154_v38  ;;  %vm391_vm15 = vcmp.lt.s32.totalorder %v390_v12, 2 }
  0xdf   :  { %577 = vcosq.f32 %v157_v43  ;;  %v376_v52 = vand.u32 2147483647, %v375_v51 }
  0xe0   :  { %579 = vsinq.f32 %v157_v43 }
  0xe1   :  { %v379_v55 = vmul.f32 %v378_v42, %v376_v52 }
  0xe3   :  { %v380_v57 = vxor.u32 2147483648, %v379_v55 }
  0xe5   :  { %v381_v24 = vsel %vm298_vm0, %v380_v57, %v379_v55  ;;  %vm388_vm0 = vweird.f32 %v700_v27 }
  0xe6   :  { %v384_v59 = vsel %vm297_vm1, %v700_v27, %v381_v24  ;;  %vm282_vm1 = vcmask 519424  }
  0xe7   :  { %581 = vcosq.f32 %v384_v59 }
  0xe8   :  { %583 = vsinq.f32 %v384_v59 }
  0xec   :  { %v578_v62 = vpop.eup %577 }
  0xed   :  { %v580_v0 = vpop.eup %579  ;;  %v169_v1 = vxor.u32 2147483648, %v578_v62 }
  0xee   :  { %v166_v2 = vxor.u32 2147483648, %v580_v0 }
  0xef   :  { %v275_v4 = vsel %vm273_vm4, %v169_v1, %v580_v0  ;;  %v170_v31 = vsel %vm168_vm3, %v169_v1, %v580_v0  ;;  %vm513_vm3 = vcmask 1044224  }
  0xf0   :  { %v272_v5 = vsel %vm270_vm6, %v578_v62, %v166_v2  ;;  %v167_v6 = vsel %vm165_vm5, %v578_v62, %v166_v2 }
  0xf1   :  { %v276_v7 = vsel %vm269_vm8, %v272_v5, %v275_v4  ;;  %v171_v63 = vsel %vm164_vm7, %v167_v6, %v170_v31 }
  0xf2   :  { %v277_v9 = vsel %vm161_vm9, nan, %v276_v7  ;;  %v172_v10 = vsel %vm161_vm9, nan, %v171_v63 }
  0xf3   :  { %279 = vrot.lane.b32.xlu1 %v277_v9, %s663_s2  ;;  %174 = vst.msk [vmem:[#allocation7] sm:$0xf] %vm173_vm2, %v172_v10  ;;  %vm404_vm2 = vcmask 781824  }
  0xf4   :  { %v582_v13 = vpop.eup %581 }
  0xf5   :  { %v584_v14 = vpop.eup %583  ;;  %v396_v15 = vxor.u32 2147483648, %v582_v13 }
  0xf6   :  { %v393_v16 = vxor.u32 2147483648, %v584_v14 }
  0xf7   :  { %v506_v17 = vsel %vm504_vm10, %v396_v15, %v584_v14  ;;  %v397_v18 = vsel %vm395_vm11, %v396_v15, %v584_v14 }
  0xf8   :  { %v503_v19 = vsel %vm501_vm12, %v582_v13, %v393_v16  ;;  %v394_v20 = vsel %vm392_vm13, %v582_v13, %v393_v16 }
  0xf9   :  { %v507_v21 = vsel %vm500_vm14, %v503_v19, %v506_v17  ;;  %v398_v22 = vsel %vm391_vm15, %v394_v20, %v397_v18 }
  0xfa   :  { %v508_v23 = vsel %vm388_vm0, nan, %v507_v21  ;;  %v399_v25 = vsel %vm388_vm0, nan, %v398_v22 }
  0xfb   :  { %510 = vrot.lane.b32.xlu1 %v508_v23, %s664_s22  ;;  %401 = vrot.lane.b32.xlu0 %v399_v25, %s665_s23 }
 0x165   :  { %v280_v29 = vpop.permute.xlu1 %279 }
 0x166   :  { %283 = vst.msk [vmem:[#allocation7] sm:$0xf] %vm282_vm1, %v280_v29 }
 0x16d   :  { %v511_v30 = vpop.permute.xlu1 %510  ;;  %v402_v32 = vpop.permute.xlu0 %401 }
 0x16e   :  { %405 = vst.msk [vmem:[#allocation7] sm:$0xf] %vm404_vm2, %v402_v32 }
 0x16f   :  { %514 = vst.msk [vmem:[#allocation7] sm:$0xf] %vm513_vm3, %v511_v30 }
 0x170   :  { %636 = shalt.err (!%p633_p0)
}
 0x171   :  { %524 = dma.vmem_to_hbm [thread:$0]  %s522_s25, 64, %s784_s3, [#allocation4]  }
 0x172   :  { %649 = dma.done.wait [#allocation4], 64  }
 0x173   :  { %650 = vsyncadd [#allocation4], 4294967232 }
 0x174   :  { %528 = vsyncpa [#allocation3], 1 }
 0x175   :  { %529 = vsyncpa [#allocation6], 1 }
 0x176   :  { %530 = vsyncpa [#allocation4], 1 }

</bundles_post_ra>
